<compile_context>
chip_gen: v5e
topology: v5e:2x2
jax: 0.10.0
libtpu: 0.0.40
codegen_flags: <defaults>
</compile_context>

<pallas_src>
from functools import partial

import numpy as np
import jax
import jax.numpy as jnp
from jax.experimental import pallas as pl
from jax.experimental.pallas import tpu as pltpu

# --- model config consistent with the module (sent_len=6 is implied by the
#     hard-coded 6//2 slicing in forward) ---
EMBEDDING_DIM = 32
N_FILTERS = 4
FILTER_SIZES = (2, 4)
OUTPUT_DIM = 3
SENT_LEN = 6
BATCH = 2

LANE = 128
ROW_ALIGN = 16                                  # bf16 packs 16 rows per (sublane, lane) tile

K_FLAT = SENT_LEN * EMBEDDING_DIM               # 192: flat (row, emb) features per example
K_PAD = 2 * LANE                                # 256: lane-padded K
CONST_LANE = K_FLAT                             # input lane carrying the constant 1.0


def _group_meta():
    """Conv groups in torch.cat order: convs (per fs), convs2 (per fs), convs3 (per fs)."""
    meta = []
    slab_defs = [
        (3, SENT_LEN, SENT_LEN // 2),  # convs:  embedded[:, :, 3:, :],  kh = sent_len//2
        (0, 3, SENT_LEN // 2),         # convs2: embedded[:, :, :3, :],  kh = sent_len//2
        (2, 4, 2),                     # convs3: embedded[:, :, 2:4, :], kh = 2
    ]
    for lo, hi, kh in slab_defs:
        for fs in FILTER_SIZES:
            kw = EMBEDDING_DIM // fs
            stride = kw // 2
            out_w = (EMBEDDING_DIM - kw) // stride + 1
            meta.append(dict(lo=lo, hi=hi, kh=kh, kw=kw, stride=stride, out_w=out_w))
    return meta


META = _group_meta()
CONV_OUT = sum(m['out_w'] * N_FILTERS for m in META)   # 120 conv outputs total
CONV_OUT_PAD = LANE                                    # 128 (padded conv columns)
CONST_COL = CONV_OUT_PAD - 1                           # constant-1 conv column (for fused tail bias)
OUT_PAD = LANE                                         # 128 (logits padded, lane-dense store)


def _round_up(a, b):
    return (a + b - 1) // b * b


# ------------------------------------------------------------------ kernel ---
def cnn_kernel(x_ref, wconv_ref, wout_ref, out_ref):
    # All six Conv2d groups + their biases (via the constant-1 input lane) as
    # ONE bf16 MXU matmul with f32 accumulation: (tb, 256) @ (256, 128).
    conv = jnp.dot(x_ref[...], wconv_ref[...], preferred_element_type=jnp.float32)
    # ELU(alpha=1) in f32 (native VPU/EUP path on all generations).  Padded
    # columns are exactly 0 -> elu 0; the constant column is 1 -> elu 1.
    act = jnp.where(conv > 0, conv, jnp.exp(conv) - 1.0)
    # avg_pool1d + fc + fc2 + both biases (via the constant column) as ONE
    # bf16 matmul: (tb, 128) @ (128, 128); unmasked lane-dense store.
    out_ref[...] = jnp.dot(act.astype(jnp.bfloat16), wout_ref[...],
                           preferred_element_type=jnp.float32)


# ----------------------------------------------------------------- wrapper ---
@partial(jax.jit, static_argnames=("tile_b",))
def cnn_forward(x, packed, tile_b=512):
    B = x.shape[0]
    tb = min(_round_up(tile_b, ROW_ALIGN), _round_up(B, ROW_ALIGN))
    B_pad = _round_up(B, tb)
    grid = (B_pad // tb,)

    # Single reshape + pad + constant lane + bf16 cast (all fused under jit);
    # the flat 192-feature layout means no slab slicing/concat on the host.
    xp = jnp.pad(x.reshape(B, K_FLAT), ((0, B_pad - B), (0, K_PAD - K_FLAT)))
    xp = xp.at[:, CONST_LANE].set(1.0)
    xp = xp.astype(jnp.bfloat16)

    out = pl.pallas_call(
        cnn_kernel,
        out_shape=jax.ShapeDtypeStruct((B_pad, OUT_PAD), jnp.float32),
        grid_spec=pltpu.PrefetchScalarGridSpec(
            num_scalar_prefetch=0,
            grid=grid,
            in_specs=[
                pl.BlockSpec((tb, K_PAD), lambda i: (i, 0)),
                # constant index_maps -> weights stay VMEM-resident across steps
                pl.BlockSpec((K_PAD, CONV_OUT_PAD), lambda i: (0, 0)),
                pl.BlockSpec((CONV_OUT_PAD, OUT_PAD), lambda i: (0, 0)),
            ],
            out_specs=pl.BlockSpec((tb, OUT_PAD), lambda i: (i, 0)),
        ),
        compiler_params=pltpu.CompilerParams(dimension_semantics=("parallel",)),
    )(xp, packed['w_conv'], packed['w_out'])

    return out[:B, :OUTPUT_DIM]


# --------------------------------------------------------- parameter packing ---
def init_params(key):
    """Deterministic, PyTorch-like uniform fan-in init (synthetic weights)."""
    nf = N_FILTERS
    hidden_dim = len(FILTER_SIZES) * nf
    cat_dim = 3 * hidden_dim
    keys = jax.random.split(key, 2 * len(META) + 4)

    conv_ws, conv_bs = [], []
    for g, m in enumerate(META):
        kh, kw = m['kh'], m['kw']
        bound = 1.0 / np.sqrt(kh * kw)
        w = jax.random.uniform(keys[2 * g], (nf, kh, kw), jnp.float32, -bound, bound)
        b = jax.random.uniform(keys[2 * g + 1], (nf,), jnp.float32, -bound, bound)
        conv_ws.append(np.asarray(w))
        conv_bs.append(np.asarray(b))

    kfc = keys[-4:]
    bound = 1.0 / np.sqrt(cat_dim)
    fc_w = np.asarray(jax.random.uniform(kfc[0], (hidden_dim, cat_dim), jnp.float32, -bound, bound))
    fc_b = np.asarray(jax.random.uniform(kfc[1], (hidden_dim,), jnp.float32, -bound, bound))
    bound2 = 1.0 / np.sqrt(hidden_dim)
    fc2_w = np.asarray(jax.random.uniform(kfc[2], (OUTPUT_DIM, hidden_dim), jnp.float32, -bound2, bound2))
    fc2_b = np.asarray(jax.random.uniform(kfc[3], (OUTPUT_DIM,), jnp.float32, -bound2, bound2))
    return conv_ws, conv_bs, fc_w, fc_b, fc2_w, fc2_b


def pack_params(conv_ws, conv_bs, fc_w, fc_b, fc2_w, fc2_b):
    """Fuse all six convs (+biases) into one block-Toeplitz matrix over the flat
    (sent_len*emb) input, and avg_pool + fc + fc2 (+biases) into one matrix."""
    nf = N_FILTERS
    E = EMBEDDING_DIM
    hidden_dim = len(FILTER_SIZES) * nf

    w_conv = np.zeros((K_PAD, CONV_OUT_PAD), np.float32)
    m_poolfc = np.zeros((CONV_OUT, hidden_dim), np.float32)

    out_off = 0
    for g, (m, w, b) in enumerate(zip(META, conv_ws, conv_bs)):
        kh, kw, stride, out_w = m['kh'], m['kw'], m['stride'], m['out_w']
        row0 = m['lo'] * E                      # flat layout: no slab duplication
        for wp in range(out_w):
            col = out_off + wp * nf
            # block-Toeplitz conv-as-matmul weights for output position wp
            for h in range(kh):
                for j in range(kw):
                    w_conv[row0 + h * E + wp * stride + j, col:col + nf] = w[:, h, j]
            # conv bias folded via the constant-1 input lane (applied before ELU,
            # exactly as Conv2d bias is in the reference)
            w_conv[CONST_LANE, col:col + nf] = b
            # avg_pool1d (mean over out_w) folded into fc's column block for group g
            m_poolfc[col:col + nf, :] = fc_w[:, g * nf:(g + 1) * nf].T / out_w
        out_off += out_w * nf

    # constant-1 conv column: survives ELU (ELU(1)=1) and injects the fused
    # fc+fc2 bias through the second matmul.
    w_conv[CONST_LANE, CONST_COL] = 1.0

    # fc -> fc2 is affine-affine with no nonlinearity in between (dropout =
    # identity in eval), so fold pooling + fc + fc2 + biases into one matrix.
    w_out = np.zeros((CONV_OUT_PAD, OUT_PAD), np.float32)
    w_out[:CONV_OUT, :OUTPUT_DIM] = m_poolfc @ fc2_w.T
    w_out[CONST_COL, :OUTPUT_DIM] = fc_b @ fc2_w.T + fc2_b

    return dict(
        w_conv=jnp.asarray(w_conv, dtype=jnp.bfloat16),   # (256, 128) bf16
        w_out=jnp.asarray(w_out, dtype=jnp.bfloat16),     # (128, 128) bf16
    )


# --------------------------------------------------------------- reference ---
def reference_forward(x, conv_ws, conv_bs, fc_w, fc_b, fc2_w, fc2_b):
    """Pure NumPy re-implementation of the PyTorch forward (eval mode, f32)."""
    x = np.asarray(x)
    B = x.shape[0]
    pooled_all = []
    for m, w, b in zip(META, conv_ws, conv_bs):
        slab = x[:, m['lo']:m['hi'], :]
        out_w, kw, stride = m['out_w'], m['kw'], m['stride']
        conv = np.zeros((B, N_FILTERS, out_w), np.float32)
        for wp in range(out_w):
            patch = slab[:, :, wp * stride:wp * stride + kw]     # (B, kh, kw)
            conv[:, :, wp] = np.einsum('bhj,fhj->bf', patch, w) + b
        act = np.where(conv > 0, conv, np.exp(conv) - 1.0)       # ELU
        pooled_all.append(act.mean(axis=2))                      # avg_pool1d + squeeze
    cat = np.concatenate(pooled_all, axis=1)
    h = cat @ fc_w.T + fc_b                                      # dropout = identity (eval)
    return h @ fc2_w.T + fc2_b                                   # self.out Softmax unused


if __name__ == "__main__":
    key = jax.random.PRNGKey(0)
    kx, kp, kx2 = jax.random.split(key, 3)

    conv_ws, conv_bs, fc_w, fc_b, fc2_w, fc2_b = init_params(kp)
    packed = pack_params(conv_ws, conv_bs, fc_w, fc_b, fc2_w, fc2_b)

    # Small example consistent with the module: batch=2, sent_len=6, emb=32.
    x = jax.random.normal(kx, (BATCH, SENT_LEN, EMBEDDING_DIM), jnp.float32)
    out = jax.block_until_ready(cnn_forward(x, packed))
    ref = reference_forward(x, conv_ws, conv_bs, fc_w, fc_b, fc2_w, fc2_b)
    # bf16 operands with f32 accumulation -> ~1e-3 abs error budget.
    np.testing.assert_allclose(np.asarray(out), ref, rtol=1e-2, atol=1e-2)

    # Larger batch exercising the multi-step, megacore-parallel batch grid
    # with VMEM-resident (constant-indexed) weights.
    xb = jax.random.normal(kx2, (1000, SENT_LEN, EMBEDDING_DIM), jnp.float32)
    outb = jax.block_until_ready(cnn_forward(xb, packed, tile_b=256))
    refb = reference_forward(xb, conv_ws, conv_bs, fc_w, fc_b, fc2_w, fc2_b)
    np.testing.assert_allclose(np.asarray(outb), refb, rtol=1e-2, atol=1e-2)

    print("KERNEL_OK")
</pallas_src>

<mosaic_0001>
module attributes {stable_mosaic.version = 11 : i64} {
  func.func @cnn_kernel(%arg0: i32, %arg1: memref<16x256xbf16, #tpu.memory_space<vmem>>, %arg2: memref<256x128xbf16, #tpu.memory_space<vmem>>, %arg3: memref<128x128xbf16, #tpu.memory_space<vmem>>, %arg4: memref<16x128xf32, #tpu.memory_space<vmem>>) attributes {dimension_semantics = [#tpu.dimension_semantics<parallel>], iteration_bounds = array<i64: 1>, scalar_prefetch = 0 : i64, scratch_operands = 0 : i64, tpu.core_type = #tpu.core_type<tc>, window_params = [{transform_indices = @transform_0, window_bounds = array<i64: 16, 256>}, {pipeline_mode = #tpu.pipeline_mode<synchronous>, transform_indices = @transform_1, window_bounds = array<i64: 256, 128>}, {pipeline_mode = #tpu.pipeline_mode<synchronous>, transform_indices = @transform_2, window_bounds = array<i64: 128, 128>}, {transform_indices = @transform_3, window_bounds = array<i64: 16, 128>}]} {
    %c0 = arith.constant 0 : index
    %c0_0 = arith.constant 0 : index
    %0 = vector.load %arg1[%c0, %c0_0] : memref<16x256xbf16, #tpu.memory_space<vmem>>, vector<16x256xbf16>
    %c0_1 = arith.constant 0 : index
    %c0_2 = arith.constant 0 : index
    %1 = vector.load %arg2[%c0_1, %c0_2] : memref<256x128xbf16, #tpu.memory_space<vmem>>, vector<256x128xbf16>
    %cst = arith.constant dense<0.000000e+00> : vector<16x128xf32>
    %2 = tpu.matmul %0, %1, %cst {dimension_numbers = #tpu.dot_dimension_numbers<[1], [0], [0], [1], [0, 0, 1, 1], [], []>} : vector<16x256xbf16>, vector<256x128xbf16>, vector<16x128xf32> -> vector<16x128xf32>
    %cst_3 = arith.constant 0.000000e+00 : f32
    %3 = vector.broadcast %cst_3 : f32 to vector<16x128xf32>
    %4 = arith.cmpf ogt, %2, %3 : vector<16x128xf32>
    %5 = math.exp %2 : vector<16x128xf32>
    %cst_4 = arith.constant 1.000000e+00 : f32
    %6 = vector.broadcast %cst_4 : f32 to vector<16x128xf32>
    %7 = arith.subf %5, %6 : vector<16x128xf32>
    %8 = arith.select %4, %2, %7 : vector<16x128xi1>, vector<16x128xf32>
    %9 = arith.truncf %8 : vector<16x128xf32> to vector<16x128xbf16>
    %c0_5 = arith.constant 0 : index
    %c0_6 = arith.constant 0 : index
    %10 = vector.load %arg3[%c0_5, %c0_6] : memref<128x128xbf16, #tpu.memory_space<vmem>>, vector<128x128xbf16>
    %cst_7 = arith.constant dense<0.000000e+00> : vector<16x128xf32>
    %11 = tpu.matmul %9, %10, %cst_7 {dimension_numbers = #tpu.dot_dimension_numbers<[1], [0], [0], [1], [0, 0, 1, 1], [], []>} : vector<16x128xbf16>, vector<128x128xbf16>, vector<16x128xf32> -> vector<16x128xf32>
    %c0_8 = arith.constant 0 : index
    %c0_9 = arith.constant 0 : index
    %12 = vector.load %arg4[%c0_8, %c0_9] : memref<16x128xf32, #tpu.memory_space<vmem>>, vector<16x128xf32>
    tpu.vector_store %arg4[%c0_8, %c0_9], %11 {strides = array<i32>} : memref<16x128xf32, #tpu.memory_space<vmem>>, vector<16x128xf32>,
    return
  }
  func.func @transform_0(%arg0: i32) -> (i32, i32) {
    %c0_i32 = arith.constant 0 : i32
    %c0_i32_0 = arith.constant 0 : i32
    return %arg0, %c0_i32 : i32, i32
  }
  func.func @transform_1(%arg0: i32) -> (i32, i32) {
    %c0_i32 = arith.constant 0 : i32
    %c0_i32_0 = arith.constant 0 : i32
    %c0_i32_1 = arith.constant 0 : i32
    return %c0_i32, %c0_i32_0 : i32, i32
  }
  func.func @transform_2(%arg0: i32) -> (i32, i32) {
    %c0_i32 = arith.constant 0 : i32
    %c0_i32_0 = arith.constant 0 : i32
    %c0_i32_1 = arith.constant 0 : i32
    return %c0_i32, %c0_i32_0 : i32, i32
  }
  func.func @transform_3(%arg0: i32) -> (i32, i32) {
    %c0_i32 = arith.constant 0 : i32
    %c0_i32_0 = arith.constant 0 : i32
    return %arg0, %c0_i32 : i32, i32
  }
}

</mosaic_0001>

<bundles_post_ra>
// kernel: cnn_forward.1
= control target key start
LH: loop header
LB: loop body
LE: loop exit
PB: predicated region body
PF: predicated region fallthrough
CT: control target
= control target key end

     0   :  { %8 = vsyncpa [#allocation3], 0  ;;  %s459_s15 = smov [#allocation2]   ;;  %s460_s17 = smov 64   ;;  %s527_s0 = inlined_call_operand.vmem [shape: bf16[16,256], index: 0, kind: input, shape index: {}]   ;;  %s528_s1 = inlined_call_operand.hbm [shape: bf16[256,128], index: 1, kind: input, shape index: {}]   ;;  %s529_s2 = inlined_call_operand.vmem [shape: bf16[128,128], index: 2, kind: input, shape index: {}]   ;;  %s530_s3 = inlined_call_operand.vmem [shape: f32[16,128], index: 3, kind: output, shape index: {}]  }
   0x1   :  { %s15_s14 = sshll.u32 %s528_s1, 4  ;;  %s17_s16 = sshll.u32 %s459_s15, 4  ;;  %s16_s14 = int_to_ptr.hbm [resolvable:$true] %s15_s14  ;;  %s18_s16 = int_to_ptr.vmem [resolvable:$true] %s17_s16 }
   0x2   :  { %s461_s18 = smov 4  }
   0x3   :  { %23 = dma.hbm_to_vmem [thread:$0]  %s16_s14, 2048, %s18_s16, [#allocation3], %s460_s17, %s460_s17, %s461_s18  }
   0x4   :  { %457 = dma.done.wait [#allocation3], 2048  }
   0x5   :  { %458 = vsyncadd [#allocation3], 4294965248  ;;  %v409_v0 = vld [vmem:[#allocation2 + $0x38] sm:$0xff]  ;;  %v408_v2 = vld [vmem:[#allocation2 + $0x30] sm:$0xff] }
   0x6   :  { %v417_v1 = vld [vmem:[#allocation2 + $0x78] sm:$0xff]  ;;  %170 = vmatpush.bf16.msra.mxu0 %v409_v0  ;;  %v416_v3 = vld [vmem:[#allocation2 + $0x70] sm:$0xff]  ;;  %v407_v4 = vld [vmem:[#allocation2 + $0x28] sm:$0xff] }
   0x7   :  { %184 = vmatpush.bf16.msra.mxu1 %v417_v1  ;;  %v415_v5 = vld [vmem:[#allocation2 + $0x68] sm:$0xff]  ;;  %v425_v6 = vld [vmem:[%s529_s2 + $0x38] sm:$0xff]  ;;  %v424_v7 = vld [vmem:[%s529_s2 + $0x30] sm:$0xff] }
   0x8   :  { %273 = vmatpush.bf16.msra.mxu2 %v425_v6  ;;  %v406_v8 = vld [vmem:[#allocation2 + $0x20] sm:$0xff]  ;;  %v405_v10 = vld [vmem:[#allocation2 + $0x18] sm:$0xff]  ;;  %v404_v12 = vld [vmem:[#allocation2 + $0x10] sm:$0xff] }
   0x9   :  { %v414_v9 = vld [vmem:[#allocation2 + $0x60] sm:$0xff]  ;;  %v413_v11 = vld [vmem:[#allocation2 + $0x58] sm:$0xff]  ;;  %v412_v13 = vld [vmem:[#allocation2 + $0x50] sm:$0xff] }
   0xa   :  { %171 = vmatpush.bf16.msra.mxu0 %v408_v2  ;;  %v403_v14 = vld [vmem:[#allocation2 + $0x8] sm:$0xff]  ;;  %v402_v16 = vld [vmem:[#allocation2] sm:$0xff]  ;;  %v421_v26 = vld [vmem:[%s529_s2 + $0x18] sm:$0xff] }
   0xb   :  { %185 = vmatpush.bf16.msra.mxu1 %v416_v3  ;;  %v411_v15 = vld [vmem:[#allocation2 + $0x48] sm:$0xff]  ;;  %v410_v17 = vld [vmem:[#allocation2 + $0x40] sm:$0xff]  ;;  %v420_v27 = vld [vmem:[%s529_s2 + $0x10] sm:$0xff] }
   0xc   :  { %274 = vmatpush.bf16.msra.mxu2 %v424_v7  ;;  %v296_v18 = vld [vmem:[%s527_s0] sm:$0xf]  ;;  %v401_v19 = vld [vmem:[%s527_s0 + $0x4] sm:$0xf0]  ;;  %v400_v20 = vld [vmem:[%s527_s0 + $0x4] sm:$0xf] }
   0xd   :  { %v298_v21 = vld [vmem:[%s527_s0 + $0x8] sm:$0xf0]  ;;  %v297_v22 = vor.u32 %v401_v19, %v296_v18  ;;  %v422_v25 = vld [vmem:[%s529_s2 + $0x20] sm:$0xff] }
   0xe   :  { %172 = vmatpush.bf16.msra.mxu0 %v407_v4  ;;  %v301_v23 = vor.u32 %v400_v20, %v298_v21  ;;  %v423_v24 = vld [vmem:[%s529_s2 + $0x28] sm:$0xff]  ;;  %v418_v29 = vld [vmem:[%s529_s2] sm:$0xff] }
   0xf   :  { %186 = vmatpush.bf16.msra.mxu1 %v415_v5  ;;  %v419_v28 = vld [vmem:[%s529_s2 + $0x8] sm:$0xff] }
  0x10   :  { %275 = vmatpush.bf16.msra.mxu2 %v423_v24 }
  0x12   :  { %173 = vmatpush.bf16.msra.mxu0 %v406_v8 }
  0x13   :  { %187 = vmatpush.bf16.msra.mxu1 %v414_v9 }
  0x14   :  { %276 = vmatpush.bf16.msra.mxu2 %v422_v25 }
  0x16   :  { %174 = vmatpush.bf16.msra.mxu0 %v405_v10 }
  0x17   :  { %188 = vmatpush.bf16.msra.mxu1 %v413_v11 }
  0x18   :  { %277 = vmatpush.bf16.msra.mxu2 %v421_v26 }
  0x1a   :  { %175 = vmatpush.bf16.msra.mxu0 %v404_v12 }
  0x1b   :  { %189 = vmatpush.bf16.msra.mxu1 %v412_v13 }
  0x1c   :  { %278 = vmatpush.bf16.msra.mxu2 %v420_v27 }
  0x1e   :  { %176 = vmatpush.bf16.msra.mxu0 %v403_v14 }
  0x1f   :  { %190 = vmatpush.bf16.msra.mxu1 %v411_v15 }
  0x20   :  { %279 = vmatpush.bf16.msra.mxu2 %v419_v28 }
  0x22   :  { %177 = vmatpush.bf16.msra.mxu0 %v402_v16 }
  0x23   :  { %191 = vmatpush.bf16.msra.mxu1 %v410_v17 }
  0x24   :  { %280 = vmatpush.bf16.msra.mxu2 %v418_v29 }
  0x25   :  { %178 = vmatmul.bf16.vlgmr.msra.gmra.mxu0 %v297_v22 }
  0x26   :  { %192 = vmatmul.bf16.vlgmr.msra.gmra.mxu1 %v301_v23 }
  0xa2   :  { %v179_v30 = vpop.f32.mrf.mxu0 }
  0xa3   :  { %v193_v31 = vpop.f32.mrf.mxu1 }
  0xa4   :  { %v194_v32 = vadd.f32 %v193_v31, %v179_v30 }
  0xa6   :  { %v200_v33 = vmul.f32 1.442695, %v194_v32  ;;  %vm198_vm0 = vcmp.gt.f32.partialorder %v194_v32, 0.0 }
  0xa8   :  { %429 = vpow2.f32 %v200_v33 }
  0xaa   :  { %v181_v34 = vpop.f32.mrf.mxu0 }
  0xab   :  { %v195_v35 = vpop.f32.mrf.mxu1 }
  0xac   :  { %v196_v36 = vadd.f32 %v195_v35, %v181_v34 }
  0xae   :  { %v202_v37 = vmul.f32 1.442695, %v196_v36  ;;  %v430_v38 = vpop.eup %429  ;;  %vm199_vm1 = vcmp.gt.f32.partialorder %v196_v36, 0.0 }
  0xaf   :  { %v366_v39 = vadd.f32 -1.0, %v430_v38 }
  0xb0   :  { %431 = vpow2.f32 %v202_v37 }
  0xb1   :  { %v206_v42 = vsel %vm198_vm0, %v194_v32, %v366_v39 }
  0xb6   :  { %v432_v40 = vpop.eup %431 }
  0xb7   :  { %v367_v41 = vadd.f32 -1.0, %v432_v40 }
  0xb9   :  { %v207_v43 = vsel %vm199_vm1, %v196_v36, %v367_v41 }
  0xba   :  { %v208_v44 = vpack.c.bf16 %v207_v43, %v206_v42 }
  0xbc   :  { %281 = vmatmul.bf16.vlgmr.msra.gmra.mxu2 %v208_v44 }
 0x13f   :  { %v282_v45 = vpop.f32.mrf.mxu2 }
 0x140   :  { %287 = vst [vmem:[%s530_s3] sm:$0xff] %v282_v45 }
 0x147   :  { %v284_v46 = vpop.f32.mrf.mxu2 }
 0x148   :  { %288 = vst [vmem:[%s530_s3 + $0x8] sm:$0xff] %v284_v46 }
 0x149   :  { %293 = vsyncpa [#allocation3], 1 }

</bundles_post_ra>
